<compile_context>
chip_gen: v6e
topology: v6e:2x2x1
jax: 0.10.0
libtpu: 0.0.40
codegen_flags: <defaults>
</compile_context>

<pallas_src>
import jax
import jax.numpy as jnp
import numpy as np
from jax import lax
from jax.experimental import pallas as pl
from jax.experimental.pallas import tpu as pltpu


def _lstm_kernel(xw_ref, whh_ref, o_ref, h_ref, c_ref):
    """One grid step = one chunk of `Tc` timesteps.

    xw_ref : (Tc, B, GP) bf16  precomputed x @ W_ih^T + b (gates packed in lanes)
    whh_ref: (H,  GP)    bf16  packed recurrent weight W_hh^T
    o_ref  : (B,  H)     f32   ReLU(h_T)
    h_ref, c_ref: (B, H) f32   persistent recurrent state across grid steps.
    """
    Tc = xw_ref.shape[0]
    H = o_ref.shape[1]

    @pl.when(pl.program_id(0) == 0)
    def _():
        h_ref[...] = jnp.zeros_like(h_ref)
        c_ref[...] = jnp.zeros_like(c_ref)

    # Packed-gate weight is only (H, 4H) bf16 (~2 vregs at H=32), so loading it
    # once as a value is cheap and does NOT blow the register file (cf. review).
    whh = whh_ref[...]

    def step(t, carry):
        h, c = carry
        # Only this matmul is on the serial path (bf16 MXU, f32 accumulate).
        gates = xw_ref[t].astype(jnp.float32) + jnp.dot(
            h.astype(whh.dtype), whh, preferred_element_type=jnp.float32)
        # One packed sigmoid (via tanh identity: 1 EUP + 2 VPU) and one packed
        # tanh cover all four gates; slices are static lane selects.
        sig = 0.5 * jnp.tanh(0.5 * gates) + 0.5
        th = jnp.tanh(gates)
        i_g = sig[:, 0 * H:1 * H]
        f_g = sig[:, 1 * H:2 * H]
        g_g = th[:, 2 * H:3 * H]
        o_g = sig[:, 3 * H:4 * H]
        c_new = f_g * c + i_g * g_g
        h_new = o_g * jnp.tanh(c_new)
        return h_new, c_new

    # Unroll length is bounded by the chunk size (Tc <= 8 here).
    h, c = lax.fori_loop(0, Tc, step, (h_ref[...], c_ref[...]), unroll=True)
    h_ref[...] = h
    c_ref[...] = c
    # Constant output block index -> HBM writeback happens once, after the last
    # grid step; the final chunk's value is the one that lands.
    o_ref[...] = jnp.maximum(h, 0.0)


def lstm_base_forward(x_btd, w_ih, w_hh, b_ih, b_hh, *,
                      chunk_t=4, matmul_dtype=jnp.bfloat16):
    """x_btd: (B, T, D) batch_first input. w_ih: (4H, D), w_hh: (4H, H),
    biases: (4H,), PyTorch gate order [i, f, g, o].
    Returns ReLU(lstm_output)[:, -1, :] -> (B, H)."""
    B, T, D = x_btd.shape
    H = w_hh.shape[1]
    G = 4 * H
    GP = ((G + 127) // 128) * 128          # pad packed-gate lane axis to 128-mult
    f32 = jnp.float32

    # Largest chunk size that divides T (keeps the T-chunk grid exact).
    chunk_t = max(1, min(chunk_t, T))
    while T % chunk_t:
        chunk_t -= 1

    # Packed gate layout: gate k occupies columns [k*H, (k+1)*H); padding (if
    # any) sits after 4H, has zero weight/bias and is never read.
    wih_t = w_ih.T.astype(f32)             # (D, 4H)
    whh_t = w_hh.T.astype(f32)             # (H, 4H)
    bias = (b_ih + b_hh).astype(f32)       # (4H,)
    if GP != G:
        wih_t = jnp.zeros((D, GP), f32).at[:, :G].set(wih_t)
        whh_t = jnp.zeros((H, GP), f32).at[:, :G].set(whh_t)
        bias = jnp.zeros((GP,), f32).at[:G].set(bias)

    # Hoisted input projection (no sequential dependence): one big matmul in f32,
    # stored bf16 for streaming (halves HBM traffic / VMEM chunk size).
    x_tbd = jnp.transpose(x_btd, (1, 0, 2)).astype(f32)      # time-major (T, B, D)
    xw = (x_tbd.reshape(T * B, D) @ wih_t + bias[None, :]).reshape(T, B, GP)
    xw = xw.astype(matmul_dtype)
    whh_p = whh_t.astype(matmul_dtype)

    itemsize = jnp.dtype(matmul_dtype).itemsize
    # Working set: 2x double-buffered xw chunk + weight + state/output scratch.
    ws = (2 * chunk_t * max(B, 8) * GP * itemsize
          + 2 * max(H, 8) * GP * itemsize
          + 4 * 8 * 128 * 4)
    vmem_limit = int(min(max(4 * ws, 4 << 20), 128 << 20))

    cost = pl.CostEstimate(
        flops=int(T * (2 * B * H * GP + 10 * B * GP)),
        transcendentals=int(T * (2 * B * GP + B * H)),
        bytes_accessed=int(T * B * GP * itemsize + H * GP * itemsize + B * H * 4),
    )

    out = pl.pallas_call(
        _lstm_kernel,
        out_shape=jax.ShapeDtypeStruct((B, H), f32),
        grid_spec=pltpu.PrefetchScalarGridSpec(
            num_scalar_prefetch=0,
            grid=(T // chunk_t,),
            in_specs=[
                # Streamed & double-buffered chunk of the precomputed projection.
                pl.BlockSpec((chunk_t, B, GP), lambda t: (t, 0, 0)),
                # Small packed recurrent weight, resident (constant block index).
                pl.BlockSpec((H, GP), lambda t: (0, 0)),
            ],
            out_specs=pl.BlockSpec((B, H), lambda t: (0, 0)),
            scratch_shapes=[pltpu.VMEM((B, H), f32),      # h state
                            pltpu.VMEM((B, H), f32)],     # c state
        ),
        compiler_params=pltpu.CompilerParams(
            dimension_semantics=("arbitrary",),           # serial recurrence axis
            vmem_limit_bytes=vmem_limit,
        ),
        cost_estimate=cost,
    )(xw, whh_p)

    return out


def lstm_base_reference(x_btd, w_ih, w_hh, b_ih, b_hh):
    """Pure-JAX f32 reference of the same forward pass."""
    B, T, D = x_btd.shape
    H = w_hh.shape[1]
    bias = b_ih + b_hh

    def step(carry, x_t):
        h, c = carry
        gates = x_t @ w_ih.T + h @ w_hh.T + bias
        i = jax.nn.sigmoid(gates[:, 0 * H:1 * H])
        f = jax.nn.sigmoid(gates[:, 1 * H:2 * H])
        g = jnp.tanh(gates[:, 2 * H:3 * H])
        o = jax.nn.sigmoid(gates[:, 3 * H:4 * H])
        c = f * c + i * g
        h = o * jnp.tanh(c)
        return (h, c), h

    h0 = jnp.zeros((B, H), jnp.float32)
    c0 = jnp.zeros((B, H), jnp.float32)
    (_, _), hs = lax.scan(step, (h0, c0), jnp.transpose(x_btd, (1, 0, 2)))
    return jnp.maximum(hs[-1], 0.0)


if __name__ == "__main__":
    # Small config consistent with the module: single-layer, unidirectional,
    # batch_first LSTM with input_size=16, hidden_size=32, seq_len=8, batch=2.
    B, T, D, H = 2, 8, 16, 32

    key = jax.random.PRNGKey(0)
    k_x, k_wih, k_whh, k_bih, k_bhh = jax.random.split(key, 5)

    x = jax.random.normal(k_x, (B, T, D), dtype=jnp.float32)
    bound = 1.0 / np.sqrt(H)                # PyTorch-like uniform init
    w_ih = jax.random.uniform(k_wih, (4 * H, D), jnp.float32, -bound, bound)
    w_hh = jax.random.uniform(k_whh, (4 * H, H), jnp.float32, -bound, bound)
    b_ih = jax.random.uniform(k_bih, (4 * H,), jnp.float32, -bound, bound)
    b_hh = jax.random.uniform(k_bhh, (4 * H,), jnp.float32, -bound, bound)

    fwd = jax.jit(lstm_base_forward)
    out = jax.block_until_ready(fwd(x, w_ih, w_hh, b_ih, b_hh))

    ref = jax.block_until_ready(lstm_base_reference(x, w_ih, w_hh, b_ih, b_hh))
    # Tolerance relaxed vs. the f32 reference because W_hh / xw are stored bf16
    # (per the perf review); elementwise math and accumulation remain f32.
    np.testing.assert_allclose(np.asarray(out), np.asarray(ref),
                               rtol=3e-2, atol=3e-2)

    print("KERNEL_OK")
</pallas_src>

<mosaic_0001>
module attributes {stable_mosaic.version = 11 : i64} {
  func.func @_lstm_kernel(%arg0: i32, %arg1: memref<4x2x128xbf16, #tpu.memory_space<vmem>>, %arg2: memref<32x128xbf16, #tpu.memory_space<vmem>>, %arg3: memref<2x32xf32, #tpu.memory_space<vmem>>, %arg4: memref<2x32xf32, #tpu.memory_space<vmem>>, %arg5: memref<2x32xf32, #tpu.memory_space<vmem>>) attributes {dimension_semantics = [#tpu.dimension_semantics<arbitrary>], iteration_bounds = array<i64: 2>, scalar_prefetch = 0 : i64, scratch_operands = 2 : i64, tpu.core_type = #tpu.core_type<tc>, window_params = [{transform_indices = @transform_0, window_bounds = array<i64: 4, 2, 128>}, {pipeline_mode = #tpu.pipeline_mode<synchronous>, transform_indices = @transform_1, window_bounds = array<i64: 32, 128>}, {pipeline_mode = #tpu.pipeline_mode<synchronous>, transform_indices = @transform_2, window_bounds = array<i64: 2, 32>}]} {
    %c0_i32 = arith.constant 0 : i32
    %0 = arith.cmpi eq, %arg0, %c0_i32 : i32
    %1 = arith.extui %0 : i1 to i32
    %c0_i32_0 = arith.constant 0 : i32
    %2 = arith.cmpi ne, %1, %c0_i32_0 : i32
    scf.if %2 {
      %cst_37 = arith.constant 0.000000e+00 : f32
      %107 = vector.broadcast %cst_37 : f32 to vector<2x32xf32>
      %c0_38 = arith.constant 0 : index
      %c0_39 = arith.constant 0 : index
      %108 = vector.load %arg4[%c0_38, %c0_39] : memref<2x32xf32, #tpu.memory_space<vmem>>, vector<2x32xf32>
      tpu.vector_store %arg4[%c0_38, %c0_39], %107 {strides = array<i32>} : memref<2x32xf32, #tpu.memory_space<vmem>>, vector<2x32xf32>,
      %cst_40 = arith.constant 0.000000e+00 : f32
      %109 = vector.broadcast %cst_40 : f32 to vector<2x32xf32>
      %c0_41 = arith.constant 0 : index
      %c0_42 = arith.constant 0 : index
      %110 = vector.load %arg5[%c0_41, %c0_42] : memref<2x32xf32, #tpu.memory_space<vmem>>, vector<2x32xf32>
      tpu.vector_store %arg5[%c0_41, %c0_42], %109 {strides = array<i32>} : memref<2x32xf32, #tpu.memory_space<vmem>>, vector<2x32xf32>,
    } else {
    }
    %c0 = arith.constant 0 : index
    %c0_1 = arith.constant 0 : index
    %3 = vector.load %arg2[%c0, %c0_1] : memref<32x128xbf16, #tpu.memory_space<vmem>>, vector<32x128xbf16>
    %c0_2 = arith.constant 0 : index
    %c0_3 = arith.constant 0 : index
    %4 = vector.load %arg4[%c0_2, %c0_3] : memref<2x32xf32, #tpu.memory_space<vmem>>, vector<2x32xf32>
    %c0_4 = arith.constant 0 : index
    %c0_5 = arith.constant 0 : index
    %5 = vector.load %arg5[%c0_4, %c0_5] : memref<2x32xf32, #tpu.memory_space<vmem>>, vector<2x32xf32>
    %c0_i32_6 = arith.constant 0 : i32
    %6 = arith.index_cast %c0_i32_6 : i32 to index
    %c0_7 = arith.constant 0 : index
    %c0_8 = arith.constant 0 : index
    %7 = vector.load %arg1[%6, %c0_7, %c0_8] : memref<4x2x128xbf16, #tpu.memory_space<vmem>>, vector<1x2x128xbf16>
    %8 = vector.shape_cast %7 : vector<1x2x128xbf16> to vector<2x128xbf16>
    %9 = arith.extf %8 : vector<2x128xbf16> to vector<2x128xf32>
    %10 = arith.truncf %4 : vector<2x32xf32> to vector<2x32xbf16>
    %cst = arith.constant dense<0.000000e+00> : vector<2x128xf32>
    %11 = tpu.matmul %10, %3, %cst {dimension_numbers = #tpu.dot_dimension_numbers<[1], [0], [0], [1], [0, 0, 1, 1], [], []>} : vector<2x32xbf16>, vector<32x128xbf16>, vector<2x128xf32> -> vector<2x128xf32>
    %12 = arith.addf %9, %11 : vector<2x128xf32>
    %cst_9 = arith.constant 5.000000e-01 : f32
    %13 = vector.broadcast %cst_9 : f32 to vector<2x128xf32>
    %14 = arith.mulf %13, %12 : vector<2x128xf32>
    %15 = math.tanh %14 : vector<2x128xf32>
    %cst_10 = arith.constant 5.000000e-01 : f32
    %16 = vector.broadcast %cst_10 : f32 to vector<2x128xf32>
    %17 = arith.mulf %16, %15 : vector<2x128xf32>
    %cst_11 = arith.constant 5.000000e-01 : f32
    %18 = vector.broadcast %cst_11 : f32 to vector<2x128xf32>
    %19 = arith.addf %17, %18 : vector<2x128xf32>
    %20 = math.tanh %12 : vector<2x128xf32>
    %21 = vector.extract_strided_slice %19 {offsets = [0, 0], sizes = [2, 32], strides = [1, 1]} : vector<2x128xf32> to vector<2x32xf32>
    %22 = vector.extract_strided_slice %19 {offsets = [0, 32], sizes = [2, 32], strides = [1, 1]} : vector<2x128xf32> to vector<2x32xf32>
    %23 = vector.extract_strided_slice %20 {offsets = [0, 64], sizes = [2, 32], strides = [1, 1]} : vector<2x128xf32> to vector<2x32xf32>
    %24 = vector.extract_strided_slice %19 {offsets = [0, 96], sizes = [2, 32], strides = [1, 1]} : vector<2x128xf32> to vector<2x32xf32>
    %25 = arith.mulf %22, %5 : vector<2x32xf32>
    %26 = arith.mulf %21, %23 : vector<2x32xf32>
    %27 = arith.addf %25, %26 : vector<2x32xf32>
    %28 = math.tanh %27 : vector<2x32xf32>
    %29 = arith.mulf %24, %28 : vector<2x32xf32>
    %c1_i32 = arith.constant 1 : i32
    %30 = arith.index_cast %c1_i32 : i32 to index
    %c0_12 = arith.constant 0 : index
    %c0_13 = arith.constant 0 : index
    %31 = vector.load %arg1[%30, %c0_12, %c0_13] : memref<4x2x128xbf16, #tpu.memory_space<vmem>>, vector<1x2x128xbf16>
    %32 = vector.shape_cast %31 : vector<1x2x128xbf16> to vector<2x128xbf16>
    %33 = arith.extf %32 : vector<2x128xbf16> to vector<2x128xf32>
    %34 = arith.truncf %29 : vector<2x32xf32> to vector<2x32xbf16>
    %cst_14 = arith.constant dense<0.000000e+00> : vector<2x128xf32>
    %35 = tpu.matmul %34, %3, %cst_14 {dimension_numbers = #tpu.dot_dimension_numbers<[1], [0], [0], [1], [0, 0, 1, 1], [], []>} : vector<2x32xbf16>, vector<32x128xbf16>, vector<2x128xf32> -> vector<2x128xf32>
    %36 = arith.addf %33, %35 : vector<2x128xf32>
    %cst_15 = arith.constant 5.000000e-01 : f32
    %37 = vector.broadcast %cst_15 : f32 to vector<2x128xf32>
    %38 = arith.mulf %37, %36 : vector<2x128xf32>
    %39 = math.tanh %38 : vector<2x128xf32>
    %cst_16 = arith.constant 5.000000e-01 : f32
    %40 = vector.broadcast %cst_16 : f32 to vector<2x128xf32>
    %41 = arith.mulf %40, %39 : vector<2x128xf32>
    %cst_17 = arith.constant 5.000000e-01 : f32
    %42 = vector.broadcast %cst_17 : f32 to vector<2x128xf32>
    %43 = arith.addf %41, %42 : vector<2x128xf32>
    %44 = math.tanh %36 : vector<2x128xf32>
    %45 = vector.extract_strided_slice %43 {offsets = [0, 0], sizes = [2, 32], strides = [1, 1]} : vector<2x128xf32> to vector<2x32xf32>
    %46 = vector.extract_strided_slice %43 {offsets = [0, 32], sizes = [2, 32], strides = [1, 1]} : vector<2x128xf32> to vector<2x32xf32>
    %47 = vector.extract_strided_slice %44 {offsets = [0, 64], sizes = [2, 32], strides = [1, 1]} : vector<2x128xf32> to vector<2x32xf32>
    %48 = vector.extract_strided_slice %43 {offsets = [0, 96], sizes = [2, 32], strides = [1, 1]} : vector<2x128xf32> to vector<2x32xf32>
    %49 = arith.mulf %46, %27 : vector<2x32xf32>
    %50 = arith.mulf %45, %47 : vector<2x32xf32>
    %51 = arith.addf %49, %50 : vector<2x32xf32>
    %52 = math.tanh %51 : vector<2x32xf32>
    %53 = arith.mulf %48, %52 : vector<2x32xf32>
    %c2_i32 = arith.constant 2 : i32
    %54 = arith.index_cast %c2_i32 : i32 to index
    %c0_18 = arith.constant 0 : index
    %c0_19 = arith.constant 0 : index
    %55 = vector.load %arg1[%54, %c0_18, %c0_19] : memref<4x2x128xbf16, #tpu.memory_space<vmem>>, vector<1x2x128xbf16>
    %56 = vector.shape_cast %55 : vector<1x2x128xbf16> to vector<2x128xbf16>
    %57 = arith.extf %56 : vector<2x128xbf16> to vector<2x128xf32>
    %58 = arith.truncf %53 : vector<2x32xf32> to vector<2x32xbf16>
    %cst_20 = arith.constant dense<0.000000e+00> : vector<2x128xf32>
    %59 = tpu.matmul %58, %3, %cst_20 {dimension_numbers = #tpu.dot_dimension_numbers<[1], [0], [0], [1], [0, 0, 1, 1], [], []>} : vector<2x32xbf16>, vector<32x128xbf16>, vector<2x128xf32> -> vector<2x128xf32>
    %60 = arith.addf %57, %59 : vector<2x128xf32>
    %cst_21 = arith.constant 5.000000e-01 : f32
    %61 = vector.broadcast %cst_21 : f32 to vector<2x128xf32>
    %62 = arith.mulf %61, %60 : vector<2x128xf32>
    %63 = math.tanh %62 : vector<2x128xf32>
    %cst_22 = arith.constant 5.000000e-01 : f32
    %64 = vector.broadcast %cst_22 : f32 to vector<2x128xf32>
    %65 = arith.mulf %64, %63 : vector<2x128xf32>
    %cst_23 = arith.constant 5.000000e-01 : f32
    %66 = vector.broadcast %cst_23 : f32 to vector<2x128xf32>
    %67 = arith.addf %65, %66 : vector<2x128xf32>
    %68 = math.tanh %60 : vector<2x128xf32>
    %69 = vector.extract_strided_slice %67 {offsets = [0, 0], sizes = [2, 32], strides = [1, 1]} : vector<2x128xf32> to vector<2x32xf32>
    %70 = vector.extract_strided_slice %67 {offsets = [0, 32], sizes = [2, 32], strides = [1, 1]} : vector<2x128xf32> to vector<2x32xf32>
    %71 = vector.extract_strided_slice %68 {offsets = [0, 64], sizes = [2, 32], strides = [1, 1]} : vector<2x128xf32> to vector<2x32xf32>
    %72 = vector.extract_strided_slice %67 {offsets = [0, 96], sizes = [2, 32], strides = [1, 1]} : vector<2x128xf32> to vector<2x32xf32>
    %73 = arith.mulf %70, %51 : vector<2x32xf32>
    %74 = arith.mulf %69, %71 : vector<2x32xf32>
    %75 = arith.addf %73, %74 : vector<2x32xf32>
    %76 = math.tanh %75 : vector<2x32xf32>
    %77 = arith.mulf %72, %76 : vector<2x32xf32>
    %c3_i32 = arith.constant 3 : i32
    %78 = arith.index_cast %c3_i32 : i32 to index
    %c0_24 = arith.constant 0 : index
    %c0_25 = arith.constant 0 : index
    %79 = vector.load %arg1[%78, %c0_24, %c0_25] : memref<4x2x128xbf16, #tpu.memory_space<vmem>>, vector<1x2x128xbf16>
    %80 = vector.shape_cast %79 : vector<1x2x128xbf16> to vector<2x128xbf16>
    %81 = arith.extf %80 : vector<2x128xbf16> to vector<2x128xf32>
    %82 = arith.truncf %77 : vector<2x32xf32> to vector<2x32xbf16>
    %cst_26 = arith.constant dense<0.000000e+00> : vector<2x128xf32>
    %83 = tpu.matmul %82, %3, %cst_26 {dimension_numbers = #tpu.dot_dimension_numbers<[1], [0], [0], [1], [0, 0, 1, 1], [], []>} : vector<2x32xbf16>, vector<32x128xbf16>, vector<2x128xf32> -> vector<2x128xf32>
    %84 = arith.addf %81, %83 : vector<2x128xf32>
    %cst_27 = arith.constant 5.000000e-01 : f32
    %85 = vector.broadcast %cst_27 : f32 to vector<2x128xf32>
    %86 = arith.mulf %85, %84 : vector<2x128xf32>
    %87 = math.tanh %86 : vector<2x128xf32>
    %cst_28 = arith.constant 5.000000e-01 : f32
    %88 = vector.broadcast %cst_28 : f32 to vector<2x128xf32>
    %89 = arith.mulf %88, %87 : vector<2x128xf32>
    %cst_29 = arith.constant 5.000000e-01 : f32
    %90 = vector.broadcast %cst_29 : f32 to vector<2x128xf32>
    %91 = arith.addf %89, %90 : vector<2x128xf32>
    %92 = math.tanh %84 : vector<2x128xf32>
    %93 = vector.extract_strided_slice %91 {offsets = [0, 0], sizes = [2, 32], strides = [1, 1]} : vector<2x128xf32> to vector<2x32xf32>
    %94 = vector.extract_strided_slice %91 {offsets = [0, 32], sizes = [2, 32], strides = [1, 1]} : vector<2x128xf32> to vector<2x32xf32>
    %95 = vector.extract_strided_slice %92 {offsets = [0, 64], sizes = [2, 32], strides = [1, 1]} : vector<2x128xf32> to vector<2x32xf32>
    %96 = vector.extract_strided_slice %91 {offsets = [0, 96], sizes = [2, 32], strides = [1, 1]} : vector<2x128xf32> to vector<2x32xf32>
    %97 = arith.mulf %94, %75 : vector<2x32xf32>
    %98 = arith.mulf %93, %95 : vector<2x32xf32>
    %99 = arith.addf %97, %98 : vector<2x32xf32>
    %100 = math.tanh %99 : vector<2x32xf32>
    %101 = arith.mulf %96, %100 : vector<2x32xf32>
    %c4_i32 = arith.constant 4 : i32
    %c0_30 = arith.constant 0 : index
    %c0_31 = arith.constant 0 : index
    %102 = vector.load %arg4[%c0_30, %c0_31] : memref<2x32xf32, #tpu.memory_space<vmem>>, vector<2x32xf32>
    tpu.vector_store %arg4[%c0_30, %c0_31], %101 {strides = array<i32>} : memref<2x32xf32, #tpu.memory_space<vmem>>, vector<2x32xf32>,
    %c0_32 = arith.constant 0 : index
    %c0_33 = arith.constant 0 : index
    %103 = vector.load %arg5[%c0_32, %c0_33] : memref<2x32xf32, #tpu.memory_space<vmem>>, vector<2x32xf32>
    tpu.vector_store %arg5[%c0_32, %c0_33], %99 {strides = array<i32>} : memref<2x32xf32, #tpu.memory_space<vmem>>, vector<2x32xf32>,
    %cst_34 = arith.constant 0.000000e+00 : f32
    %104 = vector.broadcast %cst_34 : f32 to vector<2x32xf32>
    %105 = arith.maximumf %101, %104 : vector<2x32xf32>
    %c0_35 = arith.constant 0 : index
    %c0_36 = arith.constant 0 : index
    %106 = vector.load %arg3[%c0_35, %c0_36] : memref<2x32xf32, #tpu.memory_space<vmem>>, vector<2x32xf32>
    tpu.vector_store %arg3[%c0_35, %c0_36], %105 {strides = array<i32>} : memref<2x32xf32, #tpu.memory_space<vmem>>, vector<2x32xf32>,
    return
  }
  func.func @transform_0(%arg0: i32) -> (i32, i32, i32) {
    %c0_i32 = arith.constant 0 : i32
    %c0_i32_0 = arith.constant 0 : i32
    %c0_i32_1 = arith.constant 0 : i32
    return %arg0, %c0_i32, %c0_i32_0 : i32, i32, i32
  }
  func.func @transform_1(%arg0: i32) -> (i32, i32) {
    %c0_i32 = arith.constant 0 : i32
    %c0_i32_0 = arith.constant 0 : i32
    %c0_i32_1 = arith.constant 0 : i32
    return %c0_i32, %c0_i32_0 : i32, i32
  }
  func.func @transform_2(%arg0: i32) -> (i32, i32) {
    %c0_i32 = arith.constant 0 : i32
    %c0_i32_0 = arith.constant 0 : i32
    %c0_i32_1 = arith.constant 0 : i32
    return %c0_i32, %c0_i32_0 : i32, i32
  }
}

</mosaic_0001>

<bundles_post_ra>
// kernel: lstm_base_forward.1
= control target key start
LH: loop header
LB: loop body
LE: loop exit
PB: predicated region body
PF: predicated region fallthrough
CT: control target
= control target key end

     0   :  { %7 = vsyncpa [#allocation5], 0  ;;  %s707_s9 = smov 0   ;;  %s778_s0 = inlined_call_operand.vmem [shape: bf16[8,2,128], index: 0, kind: input, shape index: {}]   ;;  %s779_s1 = inlined_call_operand.vmem [shape: bf16[32,128], index: 1, kind: input, shape index: {}]   ;;  %s780_s2 = inlined_call_operand.hbm [shape: f32[2,32], index: 2, kind: output, shape index: {}]  }
   0x1 LB: > { %s713_s10 = sadd.s32 4294967295, %s682_s9   ;;  %p539_p0 = scmp.ge.s32.totalorder %s682_s9, 1  ;;  %s682_s9 = sphi %s707_s9, %s13_s9  }
   0x2   : > { %p108_p1 = scmp.lt.s32.totalorder %s682_s9, 3 }
   0x4   : > { %p109_p2 = pnand %p539_p0, %p108_p1 }
   0x5   : > { %s540_s11 = sshll.u32 (!%p109_p2), %s713_s10, 2  ;;  %p541_p4 = scmp.ne.s32.totalorder (!%p109_p2), %s713_s10, 0 }
   0x6   : > { %112 = sbr.rel (%p109_p2) target bundleno = 2800 (0xaf0), region = 28  ;;  %p125_p3 = scmp.lt.s32.totalorder (!%p109_p2), %s540_s11, 7 }
   0xb   : > { %s782_s11 = smov (!%p125_p3, %s540_s11), 7  ;;  %133 = sbr.rel (%p541_p4) target bundleno = 18 (0x12), region = 32 }
   0xc   : > { %s721_s14 = scalar_lea.vmem %s778_s0, %s782_s11 }
  0x10   : > { %vm134_vm0 = vcmask 254976   ;;  %v684_v0 = vmov 0.0  }
  0x11   : > { %135 = vst.msk [vmem:[#allocation2] sm:$0x3] %vm134_vm0, %v684_v0  ;;  %136 = vst.msk [vmem:[#allocation3] sm:$0x3] %vm134_vm0, %v684_v0 }
  0x12 PF: > { %v622_v1 = vld [vmem:[%s779_s1 + $0x8] sm:$0xff]   ;;  %v685_v2 = vmov 0.0   ;;  %v623_v3 = vld [vmem:[%s779_s1] sm:$0xff]   ;;  %vm686_vm1 = vmmov 0   ;;  %vm158_vm2 = vcmask 261120   ;;  %s687_s19 = smov 64  }
  0x13   : > { %568 = vmatprep.subr.bf16.mxu0 %v685_v2  ;;  %576 = vmatprep.subr.bf16.mxu1 %v685_v2  ;;  %v143_v6 = vld [vmem:[%s721_s14] sm:$0x1]  ;;  %s688_s20 = smov 32   ;;  %v546_v30 = vld [vmem:[%s721_s14 + $0x1] sm:$0x1]  ;;  %s690_s21 = smov 96  }
  0x14   : > { %569 = vmatpush3.bf16.msra.mxu0 %v622_v1  ;;  %572 = vmatprep.mubr.msk.bf16.mxu0 %vm686_vm1, %v685_v2  ;;  %v144_v7 = vunpack.c.l.bf16 %v143_v6  ;;  %v238_v31 = vunpack.c.l.bf16 %v546_v30  ;;  %v548_v52 = vld [vmem:[%s721_s14 + $0x2] sm:$0x1]  ;;  %v459_v30 = vlaneseq  ;;  %vm466_vm3 = vcmask 254976   ;;  %s691_s22 = smov [#allocation4]   ;;  %p604_p5 = scmp.eq.s32.totalorder %s713_s10, 1 }
  0x15   : > { %570 = vmatprep.subr.bf16.mxu0 %v685_v2  ;;  %577 = vmatpush3.bf16.msra.mxu1 %v622_v1  ;;  %v311_v53 = vunpack.c.l.bf16 %v548_v52  ;;  %s500_s23 = sshll.u32 %s691_s22, 4  ;;  %s501_s23 = int_to_ptr.vmem [resolvable:$true] %s500_s23 }
  0x16   : > { %578 = vmatprep.subr.bf16.mxu1 %v685_v2  ;;  %580 = vmatprep.mubr.msk.bf16.mxu1 %vm686_vm1, %v685_v2  ;;  %s648_s24 = scalar_lea.vmem %s501_s23, 32  ;;  %p655_p9 = scmp.lt.s32.totalorder %s501_s23, %s501_s23 }
  0x17   : > { %p649_p6 = scmp.ne.s32.totalorder %s501_s23, %s648_s24  ;;  %p656_p10 = scmp.lt.s32.totalorder %s648_s24, %s648_s24 }
  0x18   : > { %v141_v4 = vld [vmem:[#allocation2] sm:$0x3]  ;;  %571 = vmatpush3.bf16.msra.mxu0 %v623_v3  ;;  %v545_v14 = vld.sshfl [vmem:[#allocation3] sm:$0x3 pattern:$0x76325410] }
  0x19   : > { %v145_v5 = vpack.c.bf16 %v141_v4, %v141_v4  ;;  %579 = vmatpush3.bf16.msra.mxu1 %v623_v3  ;;  %584 = vmatprep.subr.bf16.mxu0 %v685_v2  ;;  %p650_p7 = pnand %p649_p6, %p604_p5  ;;  %p657_p11 = por %p656_p10, %p655_p9 }
  0x1a   : > { %592 = vmatprep.subr.bf16.mxu1 %v685_v2 }
  0x1b   : > { %573 = vmatmul.mubr.msk.bf16.vlgmr.msra.gmra.mxu0 %vm158_vm2, %v145_v5  ;;  %p651_p8 = pneg %p650_p7 }
  0x1c   : > { %585 = vmatpush3.bf16.msra.mxu0 %v622_v1  ;;  %588 = vmatprep.mubr.msk.bf16.mxu0 %vm686_vm1, %v685_v2 }
  0x1d   : > { %586 = vmatprep.subr.bf16.mxu0 %v685_v2  ;;  %p658_p12 = pnand %p657_p11, %p651_p8 }
  0x20   : > { %587 = vmatpush3.bf16.msra.mxu0 %v623_v3 }
  0xdb   : > { %v196_v8 = vpop.f32.mrf.mxu0 }
  0xdc   : > { %v202_v9 = vadd.f32 %v196_v8, %v144_v7 }
  0xdd   : > { %v574_v10 = vpop.f32.mrf.mxu0 }
  0xde   : > { %624 = vtanh.f32 %v202_v9  ;;  %v203_v15 = vmul.f32 0.5, %v202_v9  ;;  %v550_v10 = vld [vmem:[%s721_s14 + $0x3] sm:$0x1] }
  0xdf   : > { %v199_v11 = vpop.f32.mrf.mxu0 }
  0xe0   : > { %626 = vtanh.f32 %v203_v15  ;;  %v384_v11 = vunpack.c.l.bf16 %v550_v10 }
  0xe1   : > { %v575_v12 = vpop.f32.mrf.mxu0 }
  0xeb   : > { %v625_v13 = vpop.eup %624 }
  0xec   : > { %221 = vrot.lane.b32.xlu0 %v625_v13, %s687_s19 }
  0xed   : > { %v627_v16 = vpop.eup %626 }
  0xee   : > { %v205_v17 = vmul.f32 0.5, %v627_v16 }
  0xf0   : > { %216 = vrot.lane.b32.xlu0 %v545_v14, %s688_s20  ;;  %v206_v18 = vadd.f32 0.5, %v205_v17 }
 0x15e   : > { %v222_v19 = vpop.permute.xlu0 %221 }
 0x15f   : > { %v224_v20 = vmul.f32 %v222_v19, %v206_v18 }
 0x161   : > { %226 = vrot.lane.b32.xlu1 %v224_v20, %s688_s20 }
 0x162   : > { %v217_v21 = vpop.permute.xlu0 %216 }
 0x163   : > { %v219_v22 = vmul.f32 %v217_v21, %v206_v18 }
 0x1d3   : > { %v227_v23 = vpop.permute.xlu1 %226 }
 0x1d4   : > { %v229_v24 = vadd.f32 %v227_v23, %v219_v22 }
 0x1d6   : > { %628 = vtanh.f32 %v229_v24 }
 0x1e3   : > { %v629_v25 = vpop.eup %628 }
 0x1e4   : > { %232 = vrot.lane.b32.xlu1 %v629_v25, %s687_s19 }
 0x256   : > { %v233_v26 = vpop.permute.xlu1 %232 }
 0x257   : > { %v235_v27 = vmul.f32 %v233_v26, %v206_v18 }
 0x259   : > { %v239_v28 = vpack.c.bf16 %v235_v27, %v235_v27 }
 0x25b   : > { %241 = vrot.lane.b32.xlu0 %v239_v28, %s688_s20  ;;  %v689_v28 = vmov 1983009808  }
 0x2cd   : > { %v242_v29 = vpop.permute.xlu0 %241 }
 0x2ce   : > { %581 = vmatmul.mubr.msk.bf16.vlgmr.msra.gmra.mxu1 %vm158_vm2, %v242_v29  ;;  %v457_v29 = vunpack.c.l.s4 %v689_v28 }
 0x2cf   : > { %593 = vmatpush3.bf16.msra.mxu1 %v622_v1  ;;  %596 = vmatprep.mubr.msk.bf16.mxu1 %vm686_vm1, %v685_v2 }
 0x2d0   : > { %594 = vmatprep.subr.bf16.mxu1 %v685_v2 }
 0x2d3   : > { %595 = vmatpush3.bf16.msra.mxu1 %v623_v3 }
 0x38e   : > { %v280_v32 = vpop.f32.mrf.mxu1 }
 0x38f   : > { %v286_v33 = vadd.f32 %v280_v32, %v238_v31  ;;  %v458_v31 = vunpack.c.0.s8 %v457_v29  ;;  %v460_v32 = vshrl.u32 %v459_v30, 7 }
 0x390   : > { %v582_v34 = vpop.f32.mrf.mxu1 }
 0x391   : > { %630 = vtanh.f32 %v286_v33  ;;  %v287_v38 = vmul.f32 0.5, %v286_v33  ;;  %v461_v34 = vsub.s32 %v458_v31, %v460_v32 }
 0x392   : > { %v283_v35 = vpop.f32.mrf.mxu1 }
 0x393   : > { %632 = vtanh.f32 %v287_v38 }
 0x394   : > { %v583_v36 = vpop.f32.mrf.mxu1 }
 0x39e   : > { %v631_v37 = vpop.eup %630 }
 0x39f   : > { %294 = vrot.lane.b32.xlu1 %v631_v37, %s687_s19 }
 0x3a0   : > { %v633_v39 = vpop.eup %632 }
 0x3a1   : > { %v289_v40 = vmul.f32 0.5, %v633_v39 }
 0x3a3   : > { %v290_v41 = vadd.f32 0.5, %v289_v40 }
 0x3a5   : > { %v292_v44 = vmul.f32 %v290_v41, %v229_v24 }
 0x411   : > { %v295_v42 = vpop.permute.xlu1 %294 }
 0x412   : > { %v297_v43 = vmul.f32 %v295_v42, %v290_v41 }
 0x414   : > { %299 = vrot.lane.b32.xlu0 %v297_v43, %s688_s20 }
 0x486   : > { %v300_v45 = vpop.permute.xlu0 %299 }
 0x487   : > { %v302_v46 = vadd.f32 %v300_v45, %v292_v44 }
 0x489   : > { %634 = vtanh.f32 %v302_v46 }
 0x496   : > { %v635_v47 = vpop.eup %634 }
 0x497   : > { %305 = vrot.lane.b32.xlu1 %v635_v47, %s687_s19 }
 0x509   : > { %v306_v48 = vpop.permute.xlu1 %305 }
 0x50a   : > { %v308_v49 = vmul.f32 %v306_v48, %v290_v41 }
 0x50c   : > { %v312_v50 = vpack.c.bf16 %v308_v49, %v308_v49 }
 0x50e   : > { %314 = vrot.lane.b32.xlu0 %v312_v50, %s688_s20 }
 0x580   : > { %v315_v51 = vpop.permute.xlu0 %314 }
 0x581   : > { %589 = vmatmul.mubr.msk.bf16.vlgmr.msra.gmra.mxu0 %vm158_vm2, %v315_v51 }
 0x641   : > { %v353_v54 = vpop.f32.mrf.mxu0 }
 0x642   : > { %v359_v55 = vadd.f32 %v353_v54, %v311_v53 }
 0x643   : > { %v590_v56 = vpop.f32.mrf.mxu0 }
 0x644   : > { %636 = vtanh.f32 %v359_v55  ;;  %v360_v60 = vmul.f32 0.5, %v359_v55 }
 0x645   : > { %v356_v57 = vpop.f32.mrf.mxu0 }
 0x646   : > { %638 = vtanh.f32 %v360_v60 }
 0x647   : > { %v591_v58 = vpop.f32.mrf.mxu0 }
 0x651   : > { %v637_v59 = vpop.eup %636 }
 0x652   : > { %367 = vrot.lane.b32.xlu1 %v637_v59, %s687_s19 }
 0x653   : > { %v639_v61 = vpop.eup %638 }
 0x654   : > { %v362_v62 = vmul.f32 0.5, %v639_v61 }
 0x656   : > { %v363_v63 = vadd.f32 0.5, %v362_v62 }
 0x658   : > { %v365_v2 = vmul.f32 %v363_v63, %v302_v46 }
 0x6c4   : > { %v368_v0 = vpop.permute.xlu1 %367 }
 0x6c5   : > { %v370_v1 = vmul.f32 %v368_v0, %v363_v63 }
 0x6c7   : > { %372 = vrot.lane.b32.xlu0 %v370_v1, %s688_s20 }
 0x739   : > { %v373_v3 = vpop.permute.xlu0 %372 }
 0x73a   : > { %v375_v4 = vadd.f32 %v373_v3, %v365_v2 }
 0x73c   : > { %640 = vtanh.f32 %v375_v4 }
 0x749   : > { %v641_v5 = vpop.eup %640 }
 0x74a   : > { %378 = vrot.lane.b32.xlu1 %v641_v5, %s687_s19 }
 0x7bc   : > { %v379_v6 = vpop.permute.xlu1 %378 }
 0x7bd   : > { %v381_v7 = vmul.f32 %v379_v6, %v363_v63 }
 0x7bf   : > { %v385_v8 = vpack.c.bf16 %v381_v7, %v381_v7 }
 0x7c1   : > { %387 = vrot.lane.b32.xlu0 %v385_v8, %s688_s20 }
 0x833   : > { %v388_v9 = vpop.permute.xlu0 %387 }
 0x834   : > { %597 = vmatmul.mubr.msk.bf16.vlgmr.msra.gmra.mxu1 %vm158_vm2, %v388_v9 }
 0x8f4   : > { %v426_v12 = vpop.f32.mrf.mxu1 }
 0x8f5   : > { %v432_v13 = vadd.f32 %v426_v12, %v384_v11 }
 0x8f6   : > { %v598_v14 = vpop.f32.mrf.mxu1 }
 0x8f7   : > { %642 = vtanh.f32 %v432_v13  ;;  %v433_v18 = vmul.f32 0.5, %v432_v13 }
 0x8f8   : > { %v429_v15 = vpop.f32.mrf.mxu1 }
 0x8f9   : > { %644 = vtanh.f32 %v433_v18 }
 0x8fa   : > { %v599_v16 = vpop.f32.mrf.mxu1 }
 0x904   : > { %v643_v17 = vpop.eup %642 }
 0x905   : > { %440 = vrot.lane.b32.xlu1 %v643_v17, %s687_s19 }
 0x906   : > { %v645_v19 = vpop.eup %644 }
 0x907   : > { %v435_v20 = vmul.f32 0.5, %v645_v19 }
 0x909   : > { %v436_v21 = vadd.f32 0.5, %v435_v20 }
 0x90b   : > { %v438_v24 = vmul.f32 %v436_v21, %v375_v4 }
 0x977   : > { %v441_v22 = vpop.permute.xlu1 %440 }
 0x978   : > { %v443_v23 = vmul.f32 %v441_v22, %v436_v21 }
 0x97a   : > { %445 = vrot.lane.b32.xlu0 %v443_v23, %s688_s20 }
 0x9ec   : > { %v446_v25 = vpop.permute.xlu0 %445 }
 0x9ed   : > { %v448_v26 = vadd.f32 %v446_v25, %v438_v24 }
 0x9ef   : > { %646 = vtanh.f32 %v448_v26  ;;  %v475_v39 = vrot.slane %v448_v26, %v461_v34 }
 0x9fc   : > { %v647_v27 = vpop.eup %646 }
 0x9fd   : > { %451 = vrot.lane.b32.xlu1 %v647_v27, %s687_s19 }
 0xa6f   : > { %v452_v33 = vpop.permute.xlu1 %451 }
 0xa70   : > { %v454_v35 = vmul.f32 %v452_v33, %v436_v21 }
 0xa72   : > { %v462_v36 = vrot.slane %v454_v35, %v461_v34  ;;  %v480_v37 = vmax.f32 %v454_v35, 0.0 }
 0xa74   : > { %463 = vrot.lane.b32.xlu1 %v462_v36, %s688_s20  ;;  %v488_v38 = vrot.slane %v480_v37, %v461_v34 }
 0xa76   : > { %489 = vrot.lane.b32.xlu0 %v488_v38, %s688_s20 }
 0xa7a   : > { %476 = vrot.lane.b32.xlu0 %v475_v39, %s690_s21 }
 0xae6   : > { %v464_v40 = vpop.permute.xlu1 %463 }
 0xae7   : > { %467 = vst.msk [vmem:[#allocation2] sm:$0x3] %vm466_vm3, %v464_v40 }
 0xae8   : > { %v490_v41 = vpop.permute.xlu0 %489 }
 0xae9   : > { %492 = vst.msk [vmem:[#allocation4] sm:$0x3] %vm466_vm3, %v490_v41 }
 0xaea   : > { %661 = shalt.err (!%p658_p12)
}
 0xaeb   : > { %601 = dma.vmem_to_hbm [thread:$0]  (%p604_p5), %s501_s23, 32, %s780_s2, [#allocation5]  }
 0xaec   : > { %v477_v42 = vpop.permute.xlu0 %476 }
 0xaed   : > { %479 = vst.msk [vmem:[#allocation3] sm:$0x3] %vm466_vm3, %v477_v42 }
 0xaee   : > { %677 = dma.done.wait (%p604_p5), [#allocation5], 32  }
 0xaef   : > { %679 = vsyncadd (%p604_p5), [#allocation5], 4294967264 }
 0xaf0 PF: > { %s13_s9 = sadd.s32 1, %s682_s9  }
 0xaf1   : > { %p10_p13 = scmp.ge.s32.totalorder %s13_s9, 4  }
 0xaf3   :  { %12 = sbr.rel (!%p10_p13) target bundleno = 1 (0x1), region = 62 }
 0xaf8   :  { %513 = vsyncpa [#allocation5], 1 }
 0xaf9   :  { %515 = vsyncpa [#allocation5 + $0x1], 1 }

</bundles_post_ra>
